<compile_context>
chip_gen: v6e
topology: v6e:2x2x1
jax: 0.10.0
libtpu: 0.0.40
codegen_flags: <defaults>
</compile_context>

<pallas_src>
import functools

import jax
import jax.numpy as jnp
from jax import lax
from jax.experimental import pallas as pl
from jax.experimental.pallas import tpu as pltpu

SEQ, BATCH, WORD_H, SENT_H = 8, 4, 32, 32


def sent_att_kernel(x_ref, wih_ref, whh_ref, fc1w_ref, consts_ref,
                    out_ref, h_scratch, *, seq, batch):
    H = whh_ref.shape[0]
    B = batch
    S = seq

    # Static slices of the packed constants slab (one DMA for every small
    # parameter + the selector matrix; static ref slices are free).
    bias = consts_ref[0:1, 0:4 * H]        # (1, 4H)  g-gate cols pre-scaled x2
    fc1b = consts_ref[1:2, 0:H]            # (1, H)
    fc2_row = consts_ref[2:3, 0:H]         # (1, H)
    fcw_row = consts_ref[3:4, 0:H]         # (1, H)
    fcb = consts_ref[4:5, 0:1]             # (1, 1)
    sel = consts_ref[8:8 + B, 0:S * B]     # (B, S*B) grouped-sum selector

    # Input contribution for every timestep in one MXU pass:
    # (S*B, D) @ (D, 4H) + bias -> (S*B, 4H).  x arrives pre-flattened and
    # batch-padded, so every per-step slice below is sublane-tile aligned.
    xw = jnp.dot(x_ref[...], wih_ref[...],
                 preferred_element_type=jnp.float32) + bias

    whh = whh_ref[...]
    h = jnp.zeros((B, H), jnp.float32)
    c = jnp.zeros((B, H), jnp.float32)

    # Fully-unrolled LSTM recurrence (S static).  The g-gate preactivation was
    # pre-scaled by 2 in the wrapper, so tanh(g) == 2*sigmoid(2g) - 1 comes out
    # of the single sigmoid pass -- one EUP transcendental per step removed
    # from the serial critical path (PyTorch LSTM gate order: i, f, g, o).
    for t in range(S):
        gates = xw[t * B:(t + 1) * B, :] + jnp.dot(
            h, whh, preferred_element_type=jnp.float32)          # (B, 4H)
        sg = jax.nn.sigmoid(gates)
        i_g = sg[:, 0:H]
        f_g = sg[:, H:2 * H]
        g_g = 2.0 * sg[:, 2 * H:3 * H] - 1.0                     # == tanh(g)
        o_g = sg[:, 3 * H:4 * H]
        c = f_g * c + i_g * g_g
        h = o_g * jnp.tanh(c)
        h_scratch[t * B:(t + 1) * B, :] = h                      # f_output[t]

    f_out = h_scratch[...]                                       # (S*B, H)

    # Attention scores: u = tanh(fc1(f_out)); score = <u, v_fc2>
    # (VPU multiply + lane reduce instead of a 1-lane-wide MXU dot).
    u = jnp.tanh(jnp.dot(f_out, fc1w_ref[...],
                         preferred_element_type=jnp.float32) + fc1b)
    scores = jnp.sum(u * fc2_row, axis=-1, keepdims=True)        # (S*B, 1)

    # Softmax over the seq axis per batch column, in the flat row layout:
    # shift by the global max (valid: softmax is shift-invariant within each
    # group), exponentiate, and do the grouped sums (denominator + weighted
    # pooling) with the constant selection matrix on the MXU.
    m = jnp.max(scores, axis=0, keepdims=True)                   # (1, 1)
    e = jnp.exp(scores - m)                                      # (S*B, 1)
    numer = jnp.dot(sel, e * f_out,
                    preferred_element_type=jnp.float32)          # (B, H)
    denom = jnp.dot(sel, e, preferred_element_type=jnp.float32)  # (B, 1)
    pooled = numer * pl.reciprocal(denom, approx=False)          # (B, H)

    # output = sigmoid(fc(pooled)) via VPU multiply + lane reduce.
    logit = jnp.sum(pooled * fcw_row, axis=-1,
                    keepdims=True) + fcb                         # (B, 1)
    out_ref[...] = jax.nn.sigmoid(logit)


def sent_att_net(x, params):
    S, B, D = x.shape
    H = params["whh_t"].shape[0]
    BP = 8                               # batch padded to a full sublane tile
    assert B <= BP
    SB = S * BP
    assert 4 * H <= 128 and SB <= 128, "constants slab assumes <=128 lanes"

    # Zero-pad batch to BP: tile-aligned xw slices / h stores in the kernel.
    x_pad = jnp.zeros((S, BP, D), jnp.float32).at[:, :B, :].set(x)
    x2d = x_pad.reshape(SB, D)

    # Pre-scale the g-gate columns by 2 so the kernel recovers tanh(g) from
    # the single sigmoid pass (tanh(x) = 2*sigmoid(2x) - 1).
    g_scale = jnp.ones((4 * H,), jnp.float32).at[2 * H:3 * H].set(2.0)
    wih_s = params["wih_t"] * g_scale[None, :]
    whh_s = params["whh_t"] * g_scale[None, :]
    bias_s = params["bias"] * g_scale[None, :]

    # Pack all small params + the grouped-sum selector into one slab -> one
    # DMA.  (In production this would be packed once, not per call.)
    sel = (jnp.arange(SB)[None, :] % BP
           == jnp.arange(BP)[:, None]).astype(jnp.float32)       # (BP, SB)
    consts = jnp.zeros((8 + BP, 128), jnp.float32)
    consts = consts.at[0, :4 * H].set(bias_s[0])
    consts = consts.at[1, :H].set(params["fc1b"][0])
    consts = consts.at[2, :H].set(params["fc2w_t"][:, 0])
    consts = consts.at[3, :H].set(params["fcw_t"][:, 0])
    consts = consts.at[4, 0].set(params["fcb"][0, 0])
    consts = consts.at[8:8 + BP, :SB].set(sel)

    kernel = functools.partial(sent_att_kernel, seq=S, batch=BP)
    vmem = pl.BlockSpec(memory_space=pltpu.MemorySpace.VMEM)
    out = pl.pallas_call(
        kernel,
        out_shape=jax.ShapeDtypeStruct((BP, 1), jnp.float32),
        in_specs=[vmem] * 5,
        out_specs=vmem,
        scratch_shapes=[pltpu.VMEM((SB, H), jnp.float32)],
    )(x2d, wih_s, whh_s, params["fc1w_t"], consts)
    return out[:B]


def reference(x, p):
    """Pure-JAX reference (matches PyTorch SentAttNet.forward semantics)."""
    S, B, D = x.shape
    H = p["whh_t"].shape[0]

    def step(carry, xt):
        h, c = carry
        gates = xt @ p["wih_t"] + p["bias"] + h @ p["whh_t"]
        i = jax.nn.sigmoid(gates[:, :H])
        f = jax.nn.sigmoid(gates[:, H:2 * H])
        g = jnp.tanh(gates[:, 2 * H:3 * H])
        o = jax.nn.sigmoid(gates[:, 3 * H:])
        c = f * c + i * g
        h = o * jnp.tanh(c)
        return (h, c), h

    (_, _), hs = lax.scan(step, (jnp.zeros((B, H)), jnp.zeros((B, H))), x)
    u = jnp.tanh(hs @ p["fc1w_t"] + p["fc1b"])
    w = jax.nn.softmax(u @ p["fc2w_t"], axis=0)
    pooled = jnp.sum(w * hs, axis=0)
    return jax.nn.sigmoid(pooled @ p["fcw_t"] + p["fcb"])


if __name__ == "__main__":
    key = jax.random.PRNGKey(0)
    ks = jax.random.split(key, 9)
    H, D = SENT_H, WORD_H
    scale = 1.0 / float(jnp.sqrt(jnp.float32(H)))
    uni = functools.partial(jax.random.uniform, dtype=jnp.float32,
                            minval=-scale, maxval=scale)
    params = {
        # LSTM weights (pre-transposed): W_ih^T (D,4H), W_hh^T (H,4H),
        # bias = b_ih + b_hh combined, shape (1,4H).
        "wih_t": uni(ks[0], (D, 4 * H)),
        "whh_t": uni(ks[1], (H, 4 * H)),
        "bias":  uni(ks[2], (1, 4 * H)),
        # fc1: Linear(H,H); fc2: Linear(H,1,bias=False); fc: Linear(H,1)
        "fc1w_t": uni(ks[3], (H, H)),
        "fc1b":   uni(ks[4], (1, H)),
        "fc2w_t": uni(ks[5], (H, 1)),
        "fcw_t":  uni(ks[6], (H, 1)),
        "fcb":    uni(ks[7], (1, 1)),
    }
    x = jax.random.normal(ks[8], (SEQ, BATCH, D), jnp.float32)

    out = sent_att_net(x, params)
    jax.block_until_ready(out)

    ref = reference(x, params)
    assert out.shape == (BATCH, 1), out.shape
    assert jnp.allclose(out, ref, atol=1e-5, rtol=1e-5), (out, ref)
    print("KERNEL_OK")
</pallas_src>

<mosaic_0001>
module attributes {stable_mosaic.version = 11 : i64} {
  func.func @sent_att_kernel(%arg0: memref<64x32xf32, #tpu.memory_space<vmem>>, %arg1: memref<32x128xf32, #tpu.memory_space<vmem>>, %arg2: memref<32x128xf32, #tpu.memory_space<vmem>>, %arg3: memref<32x32xf32, #tpu.memory_space<vmem>>, %arg4: memref<16x128xf32, #tpu.memory_space<vmem>>, %arg5: memref<8x1xf32, #tpu.memory_space<vmem>>, %arg6: memref<64x32xf32, #tpu.memory_space<vmem>>) attributes {dimension_semantics = [], scalar_prefetch = 0 : i64, scratch_operands = 1 : i64, tpu.core_type = #tpu.core_type<tc>} {
    %c0 = arith.constant 0 : index
    %c0_0 = arith.constant 0 : index
    %0 = vector.load %arg4[%c0, %c0_0] : memref<16x128xf32, #tpu.memory_space<vmem>>, vector<1x128xf32>
    %c1 = arith.constant 1 : index
    %c0_1 = arith.constant 0 : index
    %1 = vector.load %arg4[%c1, %c0_1] : memref<16x128xf32, #tpu.memory_space<vmem>>, vector<1x32xf32>
    %c2 = arith.constant 2 : index
    %c0_2 = arith.constant 0 : index
    %2 = vector.load %arg4[%c2, %c0_2] : memref<16x128xf32, #tpu.memory_space<vmem>>, vector<1x32xf32>
    %c3 = arith.constant 3 : index
    %c0_3 = arith.constant 0 : index
    %3 = vector.load %arg4[%c3, %c0_3] : memref<16x128xf32, #tpu.memory_space<vmem>>, vector<1x32xf32>
    %c4 = arith.constant 4 : index
    %c0_4 = arith.constant 0 : index
    %4 = vector.load %arg4[%c4, %c0_4] : memref<16x128xf32, #tpu.memory_space<vmem>>, vector<1x1xf32>
    %c8 = arith.constant 8 : index
    %c0_5 = arith.constant 0 : index
    %5 = vector.load %arg4[%c8, %c0_5] : memref<16x128xf32, #tpu.memory_space<vmem>>, vector<8x64xf32>
    %c0_6 = arith.constant 0 : index
    %c0_7 = arith.constant 0 : index
    %6 = vector.load %arg0[%c0_6, %c0_7] : memref<64x32xf32, #tpu.memory_space<vmem>>, vector<64x32xf32>
    %c0_8 = arith.constant 0 : index
    %c0_9 = arith.constant 0 : index
    %7 = vector.load %arg1[%c0_8, %c0_9] : memref<32x128xf32, #tpu.memory_space<vmem>>, vector<32x128xf32>
    %cst = arith.constant dense<0.000000e+00> : vector<64x128xf32>
    %8 = tpu.matmul %6, %7, %cst {dimension_numbers = #tpu.dot_dimension_numbers<[1], [0], [0], [1], [0, 0, 1, 1], [], []>} : vector<64x32xf32>, vector<32x128xf32>, vector<64x128xf32> -> vector<64x128xf32>
    %9 = vector.broadcast %0 : vector<1x128xf32> to vector<64x128xf32>
    %10 = arith.addf %8, %9 : vector<64x128xf32>
    %c0_10 = arith.constant 0 : index
    %c0_11 = arith.constant 0 : index
    %11 = vector.load %arg2[%c0_10, %c0_11] : memref<32x128xf32, #tpu.memory_space<vmem>>, vector<32x128xf32>
    %cst_12 = arith.constant 0.000000e+00 : f32
    %12 = vector.broadcast %cst_12 : f32 to vector<8x32xf32>
    %cst_13 = arith.constant 0.000000e+00 : f32
    %13 = vector.broadcast %cst_13 : f32 to vector<8x32xf32>
    %14 = vector.extract_strided_slice %10 {offsets = [0, 0], sizes = [8, 128], strides = [1, 1]} : vector<64x128xf32> to vector<8x128xf32>
    %cst_14 = arith.constant dense<0.000000e+00> : vector<8x128xf32>
    %15 = tpu.matmul %12, %11, %cst_14 {dimension_numbers = #tpu.dot_dimension_numbers<[1], [0], [0], [1], [0, 0, 1, 1], [], []>} : vector<8x32xf32>, vector<32x128xf32>, vector<8x128xf32> -> vector<8x128xf32>
    %16 = arith.addf %14, %15 : vector<8x128xf32>
    %17 = arith.negf %16 : vector<8x128xf32>
    %18 = math.exp %17 : vector<8x128xf32>
    %cst_15 = arith.constant 1.000000e+00 : f32
    %19 = vector.broadcast %cst_15 : f32 to vector<8x128xf32>
    %20 = arith.addf %19, %18 : vector<8x128xf32>
    %21 = arith.divf %19, %20 : vector<8x128xf32>
    %22 = vector.extract_strided_slice %21 {offsets = [0, 0], sizes = [8, 32], strides = [1, 1]} : vector<8x128xf32> to vector<8x32xf32>
    %23 = vector.extract_strided_slice %21 {offsets = [0, 32], sizes = [8, 32], strides = [1, 1]} : vector<8x128xf32> to vector<8x32xf32>
    %24 = vector.extract_strided_slice %21 {offsets = [0, 64], sizes = [8, 32], strides = [1, 1]} : vector<8x128xf32> to vector<8x32xf32>
    %cst_16 = arith.constant 2.000000e+00 : f32
    %25 = vector.broadcast %cst_16 : f32 to vector<8x32xf32>
    %26 = arith.mulf %25, %24 : vector<8x32xf32>
    %cst_17 = arith.constant 1.000000e+00 : f32
    %27 = vector.broadcast %cst_17 : f32 to vector<8x32xf32>
    %28 = arith.subf %26, %27 : vector<8x32xf32>
    %29 = vector.extract_strided_slice %21 {offsets = [0, 96], sizes = [8, 32], strides = [1, 1]} : vector<8x128xf32> to vector<8x32xf32>
    %30 = arith.mulf %23, %13 : vector<8x32xf32>
    %31 = arith.mulf %22, %28 : vector<8x32xf32>
    %32 = arith.addf %30, %31 : vector<8x32xf32>
    %33 = math.tanh %32 : vector<8x32xf32>
    %34 = arith.mulf %29, %33 : vector<8x32xf32>
    %c0_18 = arith.constant 0 : index
    %c0_19 = arith.constant 0 : index
    %35 = vector.load %arg6[%c0_18, %c0_19] : memref<64x32xf32, #tpu.memory_space<vmem>>, vector<8x32xf32>
    tpu.vector_store %arg6[%c0_18, %c0_19], %34 {strides = array<i32>} : memref<64x32xf32, #tpu.memory_space<vmem>>, vector<8x32xf32>,
    %36 = vector.extract_strided_slice %10 {offsets = [8, 0], sizes = [8, 128], strides = [1, 1]} : vector<64x128xf32> to vector<8x128xf32>
    %cst_20 = arith.constant dense<0.000000e+00> : vector<8x128xf32>
    %37 = tpu.matmul %34, %11, %cst_20 {dimension_numbers = #tpu.dot_dimension_numbers<[1], [0], [0], [1], [0, 0, 1, 1], [], []>} : vector<8x32xf32>, vector<32x128xf32>, vector<8x128xf32> -> vector<8x128xf32>
    %38 = arith.addf %36, %37 : vector<8x128xf32>
    %39 = arith.negf %38 : vector<8x128xf32>
    %40 = math.exp %39 : vector<8x128xf32>
    %cst_21 = arith.constant 1.000000e+00 : f32
    %41 = vector.broadcast %cst_21 : f32 to vector<8x128xf32>
    %42 = arith.addf %41, %40 : vector<8x128xf32>
    %43 = arith.divf %41, %42 : vector<8x128xf32>
    %44 = vector.extract_strided_slice %43 {offsets = [0, 0], sizes = [8, 32], strides = [1, 1]} : vector<8x128xf32> to vector<8x32xf32>
    %45 = vector.extract_strided_slice %43 {offsets = [0, 32], sizes = [8, 32], strides = [1, 1]} : vector<8x128xf32> to vector<8x32xf32>
    %46 = vector.extract_strided_slice %43 {offsets = [0, 64], sizes = [8, 32], strides = [1, 1]} : vector<8x128xf32> to vector<8x32xf32>
    %cst_22 = arith.constant 2.000000e+00 : f32
    %47 = vector.broadcast %cst_22 : f32 to vector<8x32xf32>
    %48 = arith.mulf %47, %46 : vector<8x32xf32>
    %cst_23 = arith.constant 1.000000e+00 : f32
    %49 = vector.broadcast %cst_23 : f32 to vector<8x32xf32>
    %50 = arith.subf %48, %49 : vector<8x32xf32>
    %51 = vector.extract_strided_slice %43 {offsets = [0, 96], sizes = [8, 32], strides = [1, 1]} : vector<8x128xf32> to vector<8x32xf32>
    %52 = arith.mulf %45, %32 : vector<8x32xf32>
    %53 = arith.mulf %44, %50 : vector<8x32xf32>
    %54 = arith.addf %52, %53 : vector<8x32xf32>
    %55 = math.tanh %54 : vector<8x32xf32>
    %56 = arith.mulf %51, %55 : vector<8x32xf32>
    %c8_24 = arith.constant 8 : index
    %c0_25 = arith.constant 0 : index
    %57 = vector.load %arg6[%c8_24, %c0_25] : memref<64x32xf32, #tpu.memory_space<vmem>>, vector<8x32xf32>
    tpu.vector_store %arg6[%c8_24, %c0_25], %56 {strides = array<i32>} : memref<64x32xf32, #tpu.memory_space<vmem>>, vector<8x32xf32>,
    %58 = vector.extract_strided_slice %10 {offsets = [16, 0], sizes = [8, 128], strides = [1, 1]} : vector<64x128xf32> to vector<8x128xf32>
    %cst_26 = arith.constant dense<0.000000e+00> : vector<8x128xf32>
    %59 = tpu.matmul %56, %11, %cst_26 {dimension_numbers = #tpu.dot_dimension_numbers<[1], [0], [0], [1], [0, 0, 1, 1], [], []>} : vector<8x32xf32>, vector<32x128xf32>, vector<8x128xf32> -> vector<8x128xf32>
    %60 = arith.addf %58, %59 : vector<8x128xf32>
    %61 = arith.negf %60 : vector<8x128xf32>
    %62 = math.exp %61 : vector<8x128xf32>
    %cst_27 = arith.constant 1.000000e+00 : f32
    %63 = vector.broadcast %cst_27 : f32 to vector<8x128xf32>
    %64 = arith.addf %63, %62 : vector<8x128xf32>
    %65 = arith.divf %63, %64 : vector<8x128xf32>
    %66 = vector.extract_strided_slice %65 {offsets = [0, 0], sizes = [8, 32], strides = [1, 1]} : vector<8x128xf32> to vector<8x32xf32>
    %67 = vector.extract_strided_slice %65 {offsets = [0, 32], sizes = [8, 32], strides = [1, 1]} : vector<8x128xf32> to vector<8x32xf32>
    %68 = vector.extract_strided_slice %65 {offsets = [0, 64], sizes = [8, 32], strides = [1, 1]} : vector<8x128xf32> to vector<8x32xf32>
    %cst_28 = arith.constant 2.000000e+00 : f32
    %69 = vector.broadcast %cst_28 : f32 to vector<8x32xf32>
    %70 = arith.mulf %69, %68 : vector<8x32xf32>
    %cst_29 = arith.constant 1.000000e+00 : f32
    %71 = vector.broadcast %cst_29 : f32 to vector<8x32xf32>
    %72 = arith.subf %70, %71 : vector<8x32xf32>
    %73 = vector.extract_strided_slice %65 {offsets = [0, 96], sizes = [8, 32], strides = [1, 1]} : vector<8x128xf32> to vector<8x32xf32>
    %74 = arith.mulf %67, %54 : vector<8x32xf32>
    %75 = arith.mulf %66, %72 : vector<8x32xf32>
    %76 = arith.addf %74, %75 : vector<8x32xf32>
    %77 = math.tanh %76 : vector<8x32xf32>
    %78 = arith.mulf %73, %77 : vector<8x32xf32>
    %c16 = arith.constant 16 : index
    %c0_30 = arith.constant 0 : index
    %79 = vector.load %arg6[%c16, %c0_30] : memref<64x32xf32, #tpu.memory_space<vmem>>, vector<8x32xf32>
    tpu.vector_store %arg6[%c16, %c0_30], %78 {strides = array<i32>} : memref<64x32xf32, #tpu.memory_space<vmem>>, vector<8x32xf32>,
    %80 = vector.extract_strided_slice %10 {offsets = [24, 0], sizes = [8, 128], strides = [1, 1]} : vector<64x128xf32> to vector<8x128xf32>
    %cst_31 = arith.constant dense<0.000000e+00> : vector<8x128xf32>
    %81 = tpu.matmul %78, %11, %cst_31 {dimension_numbers = #tpu.dot_dimension_numbers<[1], [0], [0], [1], [0, 0, 1, 1], [], []>} : vector<8x32xf32>, vector<32x128xf32>, vector<8x128xf32> -> vector<8x128xf32>
    %82 = arith.addf %80, %81 : vector<8x128xf32>
    %83 = arith.negf %82 : vector<8x128xf32>
    %84 = math.exp %83 : vector<8x128xf32>
    %cst_32 = arith.constant 1.000000e+00 : f32
    %85 = vector.broadcast %cst_32 : f32 to vector<8x128xf32>
    %86 = arith.addf %85, %84 : vector<8x128xf32>
    %87 = arith.divf %85, %86 : vector<8x128xf32>
    %88 = vector.extract_strided_slice %87 {offsets = [0, 0], sizes = [8, 32], strides = [1, 1]} : vector<8x128xf32> to vector<8x32xf32>
    %89 = vector.extract_strided_slice %87 {offsets = [0, 32], sizes = [8, 32], strides = [1, 1]} : vector<8x128xf32> to vector<8x32xf32>
    %90 = vector.extract_strided_slice %87 {offsets = [0, 64], sizes = [8, 32], strides = [1, 1]} : vector<8x128xf32> to vector<8x32xf32>
    %cst_33 = arith.constant 2.000000e+00 : f32
    %91 = vector.broadcast %cst_33 : f32 to vector<8x32xf32>
    %92 = arith.mulf %91, %90 : vector<8x32xf32>
    %cst_34 = arith.constant 1.000000e+00 : f32
    %93 = vector.broadcast %cst_34 : f32 to vector<8x32xf32>
    %94 = arith.subf %92, %93 : vector<8x32xf32>
    %95 = vector.extract_strided_slice %87 {offsets = [0, 96], sizes = [8, 32], strides = [1, 1]} : vector<8x128xf32> to vector<8x32xf32>
    %96 = arith.mulf %89, %76 : vector<8x32xf32>
    %97 = arith.mulf %88, %94 : vector<8x32xf32>
    %98 = arith.addf %96, %97 : vector<8x32xf32>
    %99 = math.tanh %98 : vector<8x32xf32>
    %100 = arith.mulf %95, %99 : vector<8x32xf32>
    %c24 = arith.constant 24 : index
    %c0_35 = arith.constant 0 : index
    %101 = vector.load %arg6[%c24, %c0_35] : memref<64x32xf32, #tpu.memory_space<vmem>>, vector<8x32xf32>
    tpu.vector_store %arg6[%c24, %c0_35], %100 {strides = array<i32>} : memref<64x32xf32, #tpu.memory_space<vmem>>, vector<8x32xf32>,
    %102 = vector.extract_strided_slice %10 {offsets = [32, 0], sizes = [8, 128], strides = [1, 1]} : vector<64x128xf32> to vector<8x128xf32>
    %cst_36 = arith.constant dense<0.000000e+00> : vector<8x128xf32>
    %103 = tpu.matmul %100, %11, %cst_36 {dimension_numbers = #tpu.dot_dimension_numbers<[1], [0], [0], [1], [0, 0, 1, 1], [], []>} : vector<8x32xf32>, vector<32x128xf32>, vector<8x128xf32> -> vector<8x128xf32>
    %104 = arith.addf %102, %103 : vector<8x128xf32>
    %105 = arith.negf %104 : vector<8x128xf32>
    %106 = math.exp %105 : vector<8x128xf32>
    %cst_37 = arith.constant 1.000000e+00 : f32
    %107 = vector.broadcast %cst_37 : f32 to vector<8x128xf32>
    %108 = arith.addf %107, %106 : vector<8x128xf32>
    %109 = arith.divf %107, %108 : vector<8x128xf32>
    %110 = vector.extract_strided_slice %109 {offsets = [0, 0], sizes = [8, 32], strides = [1, 1]} : vector<8x128xf32> to vector<8x32xf32>
    %111 = vector.extract_strided_slice %109 {offsets = [0, 32], sizes = [8, 32], strides = [1, 1]} : vector<8x128xf32> to vector<8x32xf32>
    %112 = vector.extract_strided_slice %109 {offsets = [0, 64], sizes = [8, 32], strides = [1, 1]} : vector<8x128xf32> to vector<8x32xf32>
    %cst_38 = arith.constant 2.000000e+00 : f32
    %113 = vector.broadcast %cst_38 : f32 to vector<8x32xf32>
    %114 = arith.mulf %113, %112 : vector<8x32xf32>
    %cst_39 = arith.constant 1.000000e+00 : f32
    %115 = vector.broadcast %cst_39 : f32 to vector<8x32xf32>
    %116 = arith.subf %114, %115 : vector<8x32xf32>
    %117 = vector.extract_strided_slice %109 {offsets = [0, 96], sizes = [8, 32], strides = [1, 1]} : vector<8x128xf32> to vector<8x32xf32>
    %118 = arith.mulf %111, %98 : vector<8x32xf32>
    %119 = arith.mulf %110, %116 : vector<8x32xf32>
    %120 = arith.addf %118, %119 : vector<8x32xf32>
    %121 = math.tanh %120 : vector<8x32xf32>
    %122 = arith.mulf %117, %121 : vector<8x32xf32>
    %c32 = arith.constant 32 : index
    %c0_40 = arith.constant 0 : index
    %123 = vector.load %arg6[%c32, %c0_40] : memref<64x32xf32, #tpu.memory_space<vmem>>, vector<8x32xf32>
    tpu.vector_store %arg6[%c32, %c0_40], %122 {strides = array<i32>} : memref<64x32xf32, #tpu.memory_space<vmem>>, vector<8x32xf32>,
    %124 = vector.extract_strided_slice %10 {offsets = [40, 0], sizes = [8, 128], strides = [1, 1]} : vector<64x128xf32> to vector<8x128xf32>
    %cst_41 = arith.constant dense<0.000000e+00> : vector<8x128xf32>
    %125 = tpu.matmul %122, %11, %cst_41 {dimension_numbers = #tpu.dot_dimension_numbers<[1], [0], [0], [1], [0, 0, 1, 1], [], []>} : vector<8x32xf32>, vector<32x128xf32>, vector<8x128xf32> -> vector<8x128xf32>
    %126 = arith.addf %124, %125 : vector<8x128xf32>
    %127 = arith.negf %126 : vector<8x128xf32>
    %128 = math.exp %127 : vector<8x128xf32>
    %cst_42 = arith.constant 1.000000e+00 : f32
    %129 = vector.broadcast %cst_42 : f32 to vector<8x128xf32>
    %130 = arith.addf %129, %128 : vector<8x128xf32>
    %131 = arith.divf %129, %130 : vector<8x128xf32>
    %132 = vector.extract_strided_slice %131 {offsets = [0, 0], sizes = [8, 32], strides = [1, 1]} : vector<8x128xf32> to vector<8x32xf32>
    %133 = vector.extract_strided_slice %131 {offsets = [0, 32], sizes = [8, 32], strides = [1, 1]} : vector<8x128xf32> to vector<8x32xf32>
    %134 = vector.extract_strided_slice %131 {offsets = [0, 64], sizes = [8, 32], strides = [1, 1]} : vector<8x128xf32> to vector<8x32xf32>
    %cst_43 = arith.constant 2.000000e+00 : f32
    %135 = vector.broadcast %cst_43 : f32 to vector<8x32xf32>
    %136 = arith.mulf %135, %134 : vector<8x32xf32>
    %cst_44 = arith.constant 1.000000e+00 : f32
    %137 = vector.broadcast %cst_44 : f32 to vector<8x32xf32>
    %138 = arith.subf %136, %137 : vector<8x32xf32>
    %139 = vector.extract_strided_slice %131 {offsets = [0, 96], sizes = [8, 32], strides = [1, 1]} : vector<8x128xf32> to vector<8x32xf32>
    %140 = arith.mulf %133, %120 : vector<8x32xf32>
    %141 = arith.mulf %132, %138 : vector<8x32xf32>
    %142 = arith.addf %140, %141 : vector<8x32xf32>
    %143 = math.tanh %142 : vector<8x32xf32>
    %144 = arith.mulf %139, %143 : vector<8x32xf32>
    %c40 = arith.constant 40 : index
    %c0_45 = arith.constant 0 : index
    %145 = vector.load %arg6[%c40, %c0_45] : memref<64x32xf32, #tpu.memory_space<vmem>>, vector<8x32xf32>
    tpu.vector_store %arg6[%c40, %c0_45], %144 {strides = array<i32>} : memref<64x32xf32, #tpu.memory_space<vmem>>, vector<8x32xf32>,
    %146 = vector.extract_strided_slice %10 {offsets = [48, 0], sizes = [8, 128], strides = [1, 1]} : vector<64x128xf32> to vector<8x128xf32>
    %cst_46 = arith.constant dense<0.000000e+00> : vector<8x128xf32>
    %147 = tpu.matmul %144, %11, %cst_46 {dimension_numbers = #tpu.dot_dimension_numbers<[1], [0], [0], [1], [0, 0, 1, 1], [], []>} : vector<8x32xf32>, vector<32x128xf32>, vector<8x128xf32> -> vector<8x128xf32>
    %148 = arith.addf %146, %147 : vector<8x128xf32>
    %149 = arith.negf %148 : vector<8x128xf32>
    %150 = math.exp %149 : vector<8x128xf32>
    %cst_47 = arith.constant 1.000000e+00 : f32
    %151 = vector.broadcast %cst_47 : f32 to vector<8x128xf32>
    %152 = arith.addf %151, %150 : vector<8x128xf32>
    %153 = arith.divf %151, %152 : vector<8x128xf32>
    %154 = vector.extract_strided_slice %153 {offsets = [0, 0], sizes = [8, 32], strides = [1, 1]} : vector<8x128xf32> to vector<8x32xf32>
    %155 = vector.extract_strided_slice %153 {offsets = [0, 32], sizes = [8, 32], strides = [1, 1]} : vector<8x128xf32> to vector<8x32xf32>
    %156 = vector.extract_strided_slice %153 {offsets = [0, 64], sizes = [8, 32], strides = [1, 1]} : vector<8x128xf32> to vector<8x32xf32>
    %cst_48 = arith.constant 2.000000e+00 : f32
    %157 = vector.broadcast %cst_48 : f32 to vector<8x32xf32>
    %158 = arith.mulf %157, %156 : vector<8x32xf32>
    %cst_49 = arith.constant 1.000000e+00 : f32
    %159 = vector.broadcast %cst_49 : f32 to vector<8x32xf32>
    %160 = arith.subf %158, %159 : vector<8x32xf32>
    %161 = vector.extract_strided_slice %153 {offsets = [0, 96], sizes = [8, 32], strides = [1, 1]} : vector<8x128xf32> to vector<8x32xf32>
    %162 = arith.mulf %155, %142 : vector<8x32xf32>
    %163 = arith.mulf %154, %160 : vector<8x32xf32>
    %164 = arith.addf %162, %163 : vector<8x32xf32>
    %165 = math.tanh %164 : vector<8x32xf32>
    %166 = arith.mulf %161, %165 : vector<8x32xf32>
    %c48 = arith.constant 48 : index
    %c0_50 = arith.constant 0 : index
    %167 = vector.load %arg6[%c48, %c0_50] : memref<64x32xf32, #tpu.memory_space<vmem>>, vector<8x32xf32>
    tpu.vector_store %arg6[%c48, %c0_50], %166 {strides = array<i32>} : memref<64x32xf32, #tpu.memory_space<vmem>>, vector<8x32xf32>,
    %168 = vector.extract_strided_slice %10 {offsets = [56, 0], sizes = [8, 128], strides = [1, 1]} : vector<64x128xf32> to vector<8x128xf32>
    %cst_51 = arith.constant dense<0.000000e+00> : vector<8x128xf32>
    %169 = tpu.matmul %166, %11, %cst_51 {dimension_numbers = #tpu.dot_dimension_numbers<[1], [0], [0], [1], [0, 0, 1, 1], [], []>} : vector<8x32xf32>, vector<32x128xf32>, vector<8x128xf32> -> vector<8x128xf32>
    %170 = arith.addf %168, %169 : vector<8x128xf32>
    %171 = arith.negf %170 : vector<8x128xf32>
    %172 = math.exp %171 : vector<8x128xf32>
    %cst_52 = arith.constant 1.000000e+00 : f32
    %173 = vector.broadcast %cst_52 : f32 to vector<8x128xf32>
    %174 = arith.addf %173, %172 : vector<8x128xf32>
    %175 = arith.divf %173, %174 : vector<8x128xf32>
    %176 = vector.extract_strided_slice %175 {offsets = [0, 0], sizes = [8, 32], strides = [1, 1]} : vector<8x128xf32> to vector<8x32xf32>
    %177 = vector.extract_strided_slice %175 {offsets = [0, 32], sizes = [8, 32], strides = [1, 1]} : vector<8x128xf32> to vector<8x32xf32>
    %178 = vector.extract_strided_slice %175 {offsets = [0, 64], sizes = [8, 32], strides = [1, 1]} : vector<8x128xf32> to vector<8x32xf32>
    %cst_53 = arith.constant 2.000000e+00 : f32
    %179 = vector.broadcast %cst_53 : f32 to vector<8x32xf32>
    %180 = arith.mulf %179, %178 : vector<8x32xf32>
    %cst_54 = arith.constant 1.000000e+00 : f32
    %181 = vector.broadcast %cst_54 : f32 to vector<8x32xf32>
    %182 = arith.subf %180, %181 : vector<8x32xf32>
    %183 = vector.extract_strided_slice %175 {offsets = [0, 96], sizes = [8, 32], strides = [1, 1]} : vector<8x128xf32> to vector<8x32xf32>
    %184 = arith.mulf %177, %164 : vector<8x32xf32>
    %185 = arith.mulf %176, %182 : vector<8x32xf32>
    %186 = arith.addf %184, %185 : vector<8x32xf32>
    %187 = math.tanh %186 : vector<8x32xf32>
    %188 = arith.mulf %183, %187 : vector<8x32xf32>
    %c56 = arith.constant 56 : index
    %c0_55 = arith.constant 0 : index
    %189 = vector.load %arg6[%c56, %c0_55] : memref<64x32xf32, #tpu.memory_space<vmem>>, vector<8x32xf32>
    tpu.vector_store %arg6[%c56, %c0_55], %188 {strides = array<i32>} : memref<64x32xf32, #tpu.memory_space<vmem>>, vector<8x32xf32>,
    %c0_56 = arith.constant 0 : index
    %c0_57 = arith.constant 0 : index
    %190 = vector.load %arg6[%c0_56, %c0_57] : memref<64x32xf32, #tpu.memory_space<vmem>>, vector<64x32xf32>
    %c0_58 = arith.constant 0 : index
    %c0_59 = arith.constant 0 : index
    %191 = vector.load %arg3[%c0_58, %c0_59] : memref<32x32xf32, #tpu.memory_space<vmem>>, vector<32x32xf32>
    %cst_60 = arith.constant dense<0.000000e+00> : vector<64x32xf32>
    %192 = tpu.matmul %190, %191, %cst_60 {dimension_numbers = #tpu.dot_dimension_numbers<[1], [0], [0], [1], [0, 0, 1, 1], [], []>} : vector<64x32xf32>, vector<32x32xf32>, vector<64x32xf32> -> vector<64x32xf32>
    %193 = vector.broadcast %1 : vector<1x32xf32> to vector<64x32xf32>
    %194 = arith.addf %192, %193 : vector<64x32xf32>
    %195 = math.tanh %194 : vector<64x32xf32>
    %196 = vector.broadcast %2 : vector<1x32xf32> to vector<64x32xf32>
    %197 = arith.mulf %195, %196 : vector<64x32xf32>
    %cst_61 = arith.constant dense<0.000000e+00> : vector<64xf32>
    %198 = vector.multi_reduction <add>, %197, %cst_61 [1] : vector<64x32xf32> to vector<64xf32>
    %199 = vector.shape_cast %198 : vector<64xf32> to vector<64x1xf32>
    %cst_62 = arith.constant dense<0xFF800000> : vector<1xf32>
    %200 = vector.multi_reduction <maximumf>, %199, %cst_62 [0] : vector<64x1xf32> to vector<1xf32>
    %201 = vector.shape_cast %200 : vector<1xf32> to vector<1x1xf32>
    %202 = vector.broadcast %201 : vector<1x1xf32> to vector<64x1xf32>
    %203 = arith.subf %199, %202 : vector<64x1xf32>
    %204 = math.exp %203 : vector<64x1xf32>
    %205 = vector.broadcast %204 : vector<64x1xf32> to vector<64x32xf32>
    %206 = arith.mulf %205, %190 : vector<64x32xf32>
    %cst_63 = arith.constant dense<0.000000e+00> : vector<8x32xf32>
    %207 = tpu.matmul %5, %206, %cst_63 {dimension_numbers = #tpu.dot_dimension_numbers<[1], [0], [0], [1], [0, 0, 1, 1], [], []>} : vector<8x64xf32>, vector<64x32xf32>, vector<8x32xf32> -> vector<8x32xf32>
    %cst_64 = arith.constant dense<0.000000e+00> : vector<8x1xf32>
    %208 = tpu.matmul %5, %204, %cst_64 {dimension_numbers = #tpu.dot_dimension_numbers<[1], [0], [0], [1], [0, 0, 1, 1], [], []>} : vector<8x64xf32>, vector<64x1xf32>, vector<8x1xf32> -> vector<8x1xf32>
    %209 = tpu.reciprocal %208 : vector<8x1xf32> -> vector<8x1xf32>
    %210 = vector.broadcast %209 : vector<8x1xf32> to vector<8x32xf32>
    %211 = arith.mulf %207, %210 : vector<8x32xf32>
    %212 = vector.broadcast %3 : vector<1x32xf32> to vector<8x32xf32>
    %213 = arith.mulf %211, %212 : vector<8x32xf32>
    %cst_65 = arith.constant dense<0.000000e+00> : vector<8xf32>
    %214 = vector.multi_reduction <add>, %213, %cst_65 [1] : vector<8x32xf32> to vector<8xf32>
    %215 = vector.shape_cast %214 : vector<8xf32> to vector<8x1xf32>
    %216 = vector.broadcast %4 : vector<1x1xf32> to vector<8x1xf32>
    %217 = arith.addf %215, %216 : vector<8x1xf32>
    %218 = arith.negf %217 : vector<8x1xf32>
    %219 = math.exp %218 : vector<8x1xf32>
    %cst_66 = arith.constant 1.000000e+00 : f32
    %220 = vector.broadcast %cst_66 : f32 to vector<8x1xf32>
    %221 = arith.addf %220, %219 : vector<8x1xf32>
    %222 = arith.divf %220, %221 : vector<8x1xf32>
    %c0_67 = arith.constant 0 : index
    %c0_68 = arith.constant 0 : index
    %223 = vector.load %arg5[%c0_67, %c0_68] : memref<8x1xf32, #tpu.memory_space<vmem>>, vector<8x1xf32>
    tpu.vector_store %arg5[%c0_67, %c0_68], %222 {strides = array<i32>} : memref<8x1xf32, #tpu.memory_space<vmem>>, vector<8x1xf32>,
    return
  }
}

</mosaic_0001>

<bundles_post_ra>
// kernel: tpu_custom_call.1
= control target key start
LH: loop header
LB: loop body
LE: loop exit
PB: predicated region body
PF: predicated region fallthrough
CT: control target
= control target key end

     0   :  { %10 = vsyncpa [#allocation4], 0  ;;  %s1839_s18 = smov [#allocation3]   ;;  %s2178_s0 = inlined_call_operand.vmem [shape: f32[64,32], index: 0, kind: input, shape index: {}]   ;;  %s2179_s1 = inlined_call_operand.vmem [shape: f32[32,128], index: 1, kind: input, shape index: {}]   ;;  %s2180_s2 = inlined_call_operand.vmem [shape: f32[32,128], index: 2, kind: input, shape index: {}]   ;;  %s2181_s3 = inlined_call_operand.vmem [shape: f32[32,32], index: 3, kind: input, shape index: {}]   ;;  %s2182_s4 = inlined_call_operand.hbm [shape: f32[16,128], index: 4, kind: input, shape index: {}]   ;;  %s2183_s5 = inlined_call_operand.vmem [shape: f32[8,1], index: 5, kind: output, shape index: {}]  }
   0x1   :  { %s24_s19 = sshll.u32 %s1839_s18, 4  ;;  %s25_s19 = int_to_ptr.vmem [resolvable:$true] %s24_s19 }
   0x2   :  { %s1825_s20 = scalar_lea.vmem %s25_s19, 256  ;;  %p1830_p1 = scmp.lt.s32.totalorder %s25_s19, %s25_s19 }
   0x3   :  { %p1826_p0 = scmp.ne.s32.totalorder %s25_s19, %s1825_s20  ;;  %p1831_p2 = scmp.lt.s32.totalorder %s1825_s20, %s1825_s20 }
   0x5   :  { %p1832_p3 = por %p1831_p2, %p1830_p1 }
   0x7   :  { %p1833_p4 = pnand %p1832_p3, %p1826_p0 }
   0x9   :  { %1836 = shalt.err (!%p1833_p4)
}
   0xa   :  { %s1840_s21 = smov 128   ;;  %s1841_s22 = smov 8  }
   0xb   :  { %30 = dma.hbm_to_vmem [thread:$0]  %s2182_s4, 256, %s25_s19, [#allocation4], %s1840_s21, %s1840_s21, %s1841_s22  }
   0xc   :  { %1837 = dma.done.wait [#allocation4], 256  }
   0xd   :  { %1838 = vsyncadd [#allocation4], 4294967040  ;;  %v1842_v0 = vmov 0.0   ;;  %vm1843_vm0 = vmmov 0   ;;  %v51_v1 = vld [vmem:[%s2179_s1 + $0x18] sm:$0xff]  ;;  %v50_v2 = vld [vmem:[%s2179_s1 + $0x10] sm:$0xff] }
   0xe   :  { %1575 = vmatprep.subr.mxu1 %v1842_v0  ;;  %1583 = vmatprep.mubr.msk.f32.mxu1 %vm1843_vm0, %v1842_v0  ;;  %v1892_v3 = vld [vmem:[%s2180_s2 + $0x18] sm:$0xff]  ;;  %v1898_v4 = vld [vmem:[%s2180_s2 + $0x10] sm:$0xff]  ;;  %v49_v5 = vld [vmem:[%s2179_s1 + $0x8] sm:$0xff]  ;;  %vm56_vm1 = vcmask 261120   ;;  %vm1249_vm2 = vcmask 523264   ;;  %vm1419_vm3 = vcmask 7168  }
   0xf   :  { %1555 = vmatprep.subr.mxu0 %v51_v1  ;;  %1576 = vmatpush3.msra.mxu1 %v1892_v3  ;;  %v40_v6 = vld [vmem:[%s2178_s0] sm:$0xff]  ;;  %v1911_v7 = vld [vmem:[%s2180_s2 + $0x8] sm:$0xff]  ;;  %v42_v48 = vld [vmem:[%s2178_s0 + $0x10] sm:$0xff] }
  0x10   :  { %1556 = vmatpush3.msra.mxu0 %v51_v1  ;;  %1577 = vmatprep.subr.mxu1 %v1842_v0  ;;  %v48_v8 = vld [vmem:[%s2179_s1] sm:$0xff]  ;;  %v41_v10 = vld [vmem:[%s2178_s0 + $0x8] sm:$0xff]  ;;  %s1844_s1 = smov 64   ;;  %v43_v49 = vld [vmem:[%s2178_s0 + $0x18] sm:$0xff] }
  0x11   :  { %1557 = vmatprep.subr.mxu0 %v50_v2  ;;  %1578 = vmatpush3.msra.mxu1 %v1898_v4  ;;  %v1921_v9 = vld [vmem:[%s2180_s2] sm:$0xff]  ;;  %s1845_s2 = smov 32   ;;  %v45_v51 = vld [vmem:[%s2178_s0 + $0x28] sm:$0xff]  ;;  %v46_v52 = vld [vmem:[%s2178_s0 + $0x30] sm:$0xff] }
  0x12   :  { %1558 = vmatpush3.msra.mxu0 %v50_v2  ;;  %1579 = vmatprep.subr.mxu1 %v1842_v0  ;;  %v1951_v13 = vld [vmem:[#allocation3] ss:$0 sm:$0xff]  ;;  %v47_v53 = vld [vmem:[%s2178_s0 + $0x38] sm:$0xff] }
  0x13   :  { %1559 = vmatprep.subr.mxu0 %v49_v5  ;;  %1563 = vmatprep.mubr.msk.f32.mxu0 %vm56_vm1, %v40_v6  ;;  %v44_v50 = vld [vmem:[%s2178_s0 + $0x20] sm:$0xff] }
  0x14   :  { %1560 = vmatpush3.msra.mxu0 %v49_v5  ;;  %1580 = vmatpush3.msra.mxu1 %v1911_v7 }
  0x15   :  { %1561 = vmatprep.subr.mxu0 %v48_v8  ;;  %1581 = vmatprep.subr.mxu1 %v1842_v0 }
  0x16   :  { %1562 = vmatpush3.msra.mxu0 %v48_v8  ;;  %1582 = vmatpush3.msra.mxu1 %v1921_v9 }
  0x17   :  { %1564 = vmatmul.mubr.msk.f32.vlgmr.msra.gmra.mxu0 %vm56_vm1, %v41_v10  ;;  %1584 = vmatmul.mubr.f32.vlgmr.msra.gmra.mxu1 %v1842_v0 }
  0x18   :  { %1586 = vmatprep.subr.mxu1 %v1842_v0  ;;  %1594 = vmatprep.mubr.msk.f32.mxu1 %vm1843_vm0, %v1842_v0 }
  0x19   :  { %1587 = vmatpush3.msra.mxu1 %v1892_v3  ;;  %1597 = vmatprep.subr.mxu0 %v1842_v0 }
  0x1a   :  { %1588 = vmatprep.subr.mxu1 %v1842_v0  ;;  %1598 = vmatpush3.msra.mxu0 %v1892_v3 }
  0x1b   :  { %1589 = vmatpush3.msra.mxu1 %v1898_v4  ;;  %1599 = vmatprep.subr.mxu0 %v1842_v0 }
  0x1c   :  { %1590 = vmatprep.subr.mxu1 %v1842_v0  ;;  %1600 = vmatpush3.msra.mxu0 %v1898_v4 }
  0x1d   :  { %1591 = vmatpush3.msra.mxu1 %v1911_v7  ;;  %1601 = vmatprep.subr.mxu0 %v1842_v0 }
  0x1e   :  { %1592 = vmatprep.subr.mxu1 %v1842_v0  ;;  %1602 = vmatpush3.msra.mxu0 %v1911_v7 }
  0x1f   :  { %1593 = vmatpush3.msra.mxu1 %v1921_v9  ;;  %1603 = vmatprep.subr.mxu0 %v1842_v0 }
  0x20   :  { %1604 = vmatpush3.msra.mxu0 %v1921_v9  ;;  %1608 = vmatprep.subr.mxu1 %v1842_v0 }
  0x21   :  { %1619 = vmatprep.subr.mxu0 %v1842_v0  ;;  %1566 = vmatprep.mubr.msk.f32.mxu0 %vm56_vm1, %v42_v48 }
  0x22   :  { %1567 = vmatmul.mubr.msk.f32.gmra.mxu0 %vm56_vm1, %v43_v49 }
  0x23   :  { %1569 = vmatprep.mubr.msk.f32.mxu0 %vm56_vm1, %v44_v50 }
  0x26   :  { %1570 = vmatmul.mubr.msk.f32.gmra.mxu0 %vm56_vm1, %v45_v51 }
  0x27   :  { %1572 = vmatprep.mubr.msk.f32.mxu0 %vm56_vm1, %v46_v52 }
  0x2a   :  { %1573 = vmatmul.mubr.msk.f32.gmra.mxu0 %vm56_vm1, %v47_v53 }
  0x2b   :  { %1605 = vmatprep.mubr.msk.f32.mxu0 %vm1843_vm0, %v1842_v0 }
  0xd7   :  { %v1565_v11 = vpop.f32.mrf.mxu0  ;;  %v259_v12 = vpop.f32.mrf.mxu1 }
  0xd8   :  { %v153_v33 = vadd.f32 %v1565_v11, %v1951_v13 }
  0xd9   :  { %v147_v14 = vpop.f32.mrf.mxu0  ;;  %v1585_v15 = vpop.f32.mrf.mxu1 }
  0xda   :  { %v148_v16 = vadd.f32 %v1951_v13, %v147_v14 }
  0xdc   :  { %v263_v17 = vadd.f32 %v259_v12, %v148_v16 }
  0xde   :  { %v1435_v18 = vmul.f32 -1.442695, %v263_v17 }
  0xe0   :  { %1731 = vpow2.f32 %v1435_v18 }
  0xe2   :  { %v1568_v58 = vpop.f32.mrf.mxu0 }
  0xe4   :  { %v157_v59 = vpop.f32.mrf.mxu0 }
  0xe5   :  { %v158_v1 = vadd.f32 %v1951_v13, %v157_v59 }
  0xe6   :  { %v2013_v60 = vpop.f32.mrf.mxu0 }
  0xe8   :  { %v2015_v61 = vpop.f32.mrf.mxu0 }
  0xea   :  { %v2017_v62 = vpop.f32.mrf.mxu0 }
  0xec   :  { %v2019_v63 = vpop.f32.mrf.mxu0 }
  0xed   :  { %v1732_v19 = vpop.eup %1731 }
  0xee   :  { %v267_v20 = vadd.f32 1.0, %v1732_v19 }
  0xf0   :  { %1733 = vrcp.f32 %v267_v20 }
  0xfd   :  { %v1734_v21 = vpop.eup %1733 }
  0xfe   :  { %v270_v22 = vmul.f32 2.0, %v1734_v21  ;;  %v272_v26 = vmul.f32 0.0, %v1734_v21 }
 0x100   :  { %v1436_v23 = vadd.f32 -1.0, %v270_v22 }
 0x102   :  { %274 = vrot.lane.b32.xlu0 %v1436_v23, %s1844_s1 }
 0x174   :  { %v275_v24 = vpop.permute.xlu0 %274 }
 0x175   :  { %v277_v25 = vmul.f32 %v1734_v21, %v275_v24 }
 0x177   :  { %279 = vrot.lane.b32.xlu0 %v277_v25, %s1845_s2  ;;  %v163_v25 = vadd.f32 %v1568_v58, %v1951_v13 }
 0x1e9   :  { %v280_v27 = vpop.permute.xlu0 %279 }
 0x1ea   :  { %v282_v28 = vadd.f32 %v280_v27, %v272_v26 }
 0x1ec   :  { %1735 = vtanh.f32 %v282_v28 }
 0x1f9   :  { %v1736_v29 = vpop.eup %1735 }
 0x1fa   :  { %285 = vrot.lane.b32.xlu1 %v1736_v29, %s1844_s1 }
 0x26c   :  { %v286_v30 = vpop.permute.xlu1 %285 }
 0x26d   :  { %v288_v31 = vmul.f32 %v1734_v21, %v286_v30 }
 0x26f   :  { %290 = vrot.lane.b32.xlu1 %v288_v31, %s1845_s2 }
 0x2e1   :  { %v291_v32 = vpop.permute.xlu1 %290 }
 0x2e2   :  { %293 = vst.msk [vmem:[#allocation2] sm:$0xff] %vm56_vm1, %v291_v32  ;;  %1595 = vmatmul.mubr.msk.f32.vlgmr.msra.gmra.mxu1 %vm56_vm1, %v291_v32 }
 0x2e3   :  { %1609 = vmatpush3.msra.mxu1 %v1892_v3  ;;  %1616 = vmatprep.mubr.msk.f32.mxu1 %vm1843_vm0, %v1842_v0 }
 0x2e4   :  { %1610 = vmatprep.subr.mxu1 %v1842_v0 }
 0x2e5   :  { %1611 = vmatpush3.msra.mxu1 %v1898_v4 }
 0x2e6   :  { %1612 = vmatprep.subr.mxu1 %v1842_v0 }
 0x2e7   :  { %1613 = vmatpush3.msra.mxu1 %v1911_v7 }
 0x2e8   :  { %1614 = vmatprep.subr.mxu1 %v1842_v0 }
 0x2e9   :  { %1615 = vmatpush3.msra.mxu1 %v1921_v9 }
 0x2ea   :  { %1630 = vmatprep.subr.mxu1 %v1842_v0 }
 0x3a2   :  { %v362_v34 = vpop.f32.mrf.mxu1 }
 0x3a3   :  { %v366_v35 = vadd.f32 %v362_v34, %v153_v33 }
 0x3a4   :  { %v1596_v36 = vpop.f32.mrf.mxu1 }
 0x3a5   :  { %v1438_v37 = vmul.f32 -1.442695, %v366_v35 }
 0x3a7   :  { %1737 = vpow2.f32 %v1438_v37 }
 0x3b4   :  { %v1738_v38 = vpop.eup %1737 }
 0x3b5   :  { %v370_v39 = vadd.f32 1.0, %v1738_v38 }
 0x3b7   :  { %1739 = vrcp.f32 %v370_v39 }
 0x3c4   :  { %v1740_v40 = vpop.eup %1739 }
 0x3c5   :  { %v373_v41 = vmul.f32 2.0, %v1740_v40  ;;  %v375_v45 = vmul.f32 %v1740_v40, %v282_v28 }
 0x3c7   :  { %v1439_v42 = vadd.f32 -1.0, %v373_v41 }
 0x3c9   :  { %377 = vrot.lane.b32.xlu0 %v1439_v42, %s1844_s1 }
 0x43b   :  { %v378_v43 = vpop.permute.xlu0 %377 }
 0x43c   :  { %v380_v44 = vmul.f32 %v1740_v40, %v378_v43 }
 0x43e   :  { %382 = vrot.lane.b32.xlu1 %v380_v44, %s1845_s2  ;;  %v168_v44 = vadd.f32 %v1951_v13, %v2015_v61 }
 0x4b0   :  { %v383_v46 = vpop.permute.xlu1 %382 }
 0x4b1   :  { %v385_v47 = vadd.f32 %v383_v46, %v375_v45 }
 0x4b3   :  { %1741 = vtanh.f32 %v385_v47 }
 0x4c0   :  { %v1742_v54 = vpop.eup %1741 }
 0x4c1   :  { %388 = vrot.lane.b32.xlu0 %v1742_v54, %s1844_s1 }
 0x533   :  { %v389_v55 = vpop.permute.xlu0 %388 }
 0x534   :  { %v391_v56 = vmul.f32 %v1740_v40, %v389_v55 }
 0x536   :  { %393 = vrot.lane.b32.xlu1 %v391_v56, %s1845_s2 }
 0x5a8   :  { %v394_v57 = vpop.permute.xlu1 %393 }
 0x5a9   :  { %396 = vst.msk [vmem:[#allocation2 + $0x8] sm:$0xff] %vm56_vm1, %v394_v57  ;;  %1606 = vmatmul.mubr.msk.f32.vlgmr.msra.gmra.mxu0 %vm56_vm1, %v394_v57 }
 0x5aa   :  { %1620 = vmatpush3.msra.mxu0 %v1892_v3  ;;  %1627 = vmatprep.mubr.msk.f32.mxu0 %vm1843_vm0, %v1842_v0 }
 0x5ab   :  { %1621 = vmatprep.subr.mxu0 %v1842_v0 }
 0x5ac   :  { %1622 = vmatpush3.msra.mxu0 %v1898_v4 }
 0x5ad   :  { %1623 = vmatprep.subr.mxu0 %v1842_v0 }
 0x5ae   :  { %1624 = vmatpush3.msra.mxu0 %v1911_v7 }
 0x5af   :  { %1625 = vmatprep.subr.mxu0 %v1842_v0 }
 0x5b0   :  { %1626 = vmatpush3.msra.mxu0 %v1921_v9 }
 0x5b1   :  { %1641 = vmatprep.subr.mxu0 %v1842_v0 }
 0x669   :  { %v465_v2 = vpop.f32.mrf.mxu0 }
 0x66a   :  { %v469_v5 = vadd.f32 %v465_v2, %v158_v1 }
 0x66b   :  { %v1607_v6 = vpop.f32.mrf.mxu0 }
 0x66c   :  { %v1441_v8 = vmul.f32 -1.442695, %v469_v5 }
 0x66e   :  { %1743 = vpow2.f32 %v1441_v8 }
 0x67b   :  { %v1744_v10 = vpop.eup %1743 }
 0x67c   :  { %v473_v11 = vadd.f32 1.0, %v1744_v10 }
 0x67e   :  { %1745 = vrcp.f32 %v473_v11 }
 0x68b   :  { %v1746_v12 = vpop.eup %1745 }
 0x68c   :  { %v476_v14 = vmul.f32 2.0, %v1746_v12  ;;  %v478_v18 = vmul.f32 %v1746_v12, %v385_v47 }
 0x68e   :  { %v1442_v15 = vadd.f32 -1.0, %v476_v14 }
 0x690   :  { %480 = vrot.lane.b32.xlu0 %v1442_v15, %s1844_s1 }
 0x702   :  { %v481_v16 = vpop.permute.xlu0 %480 }
 0x703   :  { %v483_v17 = vmul.f32 %v1746_v12, %v481_v16 }
 0x705   :  { %485 = vrot.lane.b32.xlu1 %v483_v17, %s1845_s2 }
 0x777   :  { %v486_v19 = vpop.permute.xlu1 %485 }
 0x778   :  { %v488_v20 = vadd.f32 %v486_v19, %v478_v18  ;;  %v1026_v18 = vld [vmem:[%s2181_s3 + $0x18] sm:$0xff] }
 0x77a   :  { %1747 = vtanh.f32 %v488_v20 }
 0x787   :  { %v1748_v21 = vpop.eup %1747 }
 0x788   :  { %491 = vrot.lane.b32.xlu0 %v1748_v21, %s1844_s1 }
 0x7fa   :  { %v492_v22 = vpop.permute.xlu0 %491 }
 0x7fb   :  { %v494_v23 = vmul.f32 %v1746_v12, %v492_v22 }
 0x7fd   :  { %496 = vrot.lane.b32.xlu1 %v494_v23, %s1845_s2  ;;  %v1025_v23 = vld [vmem:[%s2181_s3 + $0x10] sm:$0xff] }
 0x86f   :  { %v497_v24 = vpop.permute.xlu1 %496 }
 0x870   :  { %499 = vst.msk [vmem:[#allocation2 + $0x10] sm:$0xff] %vm56_vm1, %v497_v24  ;;  %1617 = vmatmul.mubr.msk.f32.vlgmr.msra.gmra.mxu1 %vm56_vm1, %v497_v24  ;;  %v2086_v24 = vld [vmem:[#allocation2] sm:$0xff] }
 0x871   :  { %1631 = vmatpush3.msra.mxu1 %v1892_v3  ;;  %1638 = vmatprep.mubr.msk.f32.mxu1 %vm1843_vm0, %v1842_v0 }
 0x872   :  { %1632 = vmatprep.subr.mxu1 %v1842_v0 }
 0x873   :  { %1633 = vmatpush3.msra.mxu1 %v1898_v4 }
 0x874   :  { %1634 = vmatprep.subr.mxu1 %v1842_v0 }
 0x875   :  { %1635 = vmatpush3.msra.mxu1 %v1911_v7 }
 0x876   :  { %1636 = vmatprep.subr.mxu1 %v1842_v0 }
 0x877   :  { %1637 = vmatpush3.msra.mxu1 %v1921_v9 }
 0x878   :  { %1652 = vmatprep.subr.mxu1 %v1842_v0 }
 0x930   :  { %v568_v26 = vpop.f32.mrf.mxu1 }
 0x931   :  { %v572_v27 = vadd.f32 %v568_v26, %v163_v25  ;;  %v1024_v25 = vld [vmem:[%s2181_s3 + $0x8] sm:$0xff]  ;;  %v1023_v26 = vld [vmem:[%s2181_s3] sm:$0xff] }
 0x932   :  { %v1618_v28 = vpop.f32.mrf.mxu1 }
 0x933   :  { %v1444_v29 = vmul.f32 -1.442695, %v572_v27  ;;  %v2096_v27 = vld [vmem:[#allocation2 + $0x8] sm:$0xff]  ;;  %v2100_v28 = vld [vmem:[#allocation2 + $0x10] sm:$0xff] }
 0x935   :  { %1749 = vpow2.f32 %v1444_v29 }
 0x942   :  { %v1750_v30 = vpop.eup %1749 }
 0x943   :  { %v576_v31 = vadd.f32 1.0, %v1750_v30 }
 0x945   :  { %1751 = vrcp.f32 %v576_v31 }
 0x952   :  { %v1752_v32 = vpop.eup %1751 }
 0x953   :  { %v579_v33 = vmul.f32 2.0, %v1752_v32  ;;  %v581_v37 = vmul.f32 %v1752_v32, %v488_v20 }
 0x955   :  { %v1445_v34 = vadd.f32 -1.0, %v579_v33 }
 0x957   :  { %583 = vrot.lane.b32.xlu0 %v1445_v34, %s1844_s1 }
 0x9c9   :  { %v584_v35 = vpop.permute.xlu0 %583 }
 0x9ca   :  { %v586_v36 = vmul.f32 %v1752_v32, %v584_v35 }
 0x9cc   :  { %588 = vrot.lane.b32.xlu1 %v586_v36, %s1845_s2 }
 0xa3e   :  { %v589_v38 = vpop.permute.xlu1 %588 }
 0xa3f   :  { %v591_v39 = vadd.f32 %v589_v38, %v581_v37 }
 0xa41   :  { %1753 = vtanh.f32 %v591_v39 }
 0xa4e   :  { %v1754_v40 = vpop.eup %1753 }
 0xa4f   :  { %594 = vrot.lane.b32.xlu0 %v1754_v40, %s1844_s1 }
 0xac1   :  { %v595_v41 = vpop.permute.xlu0 %594 }
 0xac2   :  { %v597_v42 = vmul.f32 %v1752_v32, %v595_v41  ;;  %v178_v32 = vadd.f32 %v1951_v13, %v2019_v63 }
 0xac4   :  { %599 = vrot.lane.b32.xlu1 %v597_v42, %s1845_s2 }
 0xb36   :  { %v600_v43 = vpop.permute.xlu1 %599 }
 0xb37   :  { %602 = vst.msk [vmem:[#allocation2 + $0x18] sm:$0xff] %vm56_vm1, %v600_v43  ;;  %1628 = vmatmul.mubr.msk.f32.vlgmr.msra.gmra.mxu0 %vm56_vm1, %v600_v43 }
 0xb38   :  { %1642 = vmatpush3.msra.mxu0 %v1892_v3  ;;  %1649 = vmatprep.mubr.msk.f32.mxu0 %vm1843_vm0, %v1842_v0 }
 0xb39   :  { %1643 = vmatprep.subr.mxu0 %v1842_v0 }
 0xb3a   :  { %1644 = vmatpush3.msra.mxu0 %v1898_v4 }
 0xb3b   :  { %1645 = vmatprep.subr.mxu0 %v1842_v0 }
 0xb3c   :  { %1646 = vmatpush3.msra.mxu0 %v1911_v7 }
 0xb3d   :  { %1647 = vmatprep.subr.mxu0 %v1842_v0 }
 0xb3e   :  { %1648 = vmatpush3.msra.mxu0 %v1921_v9  ;;  %v2105_v29 = vld [vmem:[#allocation2 + $0x18] sm:$0xff] }
 0xb3f   :  { %1663 = vmatprep.subr.mxu0 %v1026_v18 }
 0xbf7   :  { %v671_v45 = vpop.f32.mrf.mxu0 }
 0xbf8   :  { %v675_v46 = vadd.f32 %v671_v45, %v168_v44 }
 0xbf9   :  { %v1629_v47 = vpop.f32.mrf.mxu0 }
 0xbfa   :  { %v1447_v48 = vmul.f32 -1.442695, %v675_v46 }
 0xbfc   :  { %1755 = vpow2.f32 %v1447_v48 }
 0xc09   :  { %v1756_v49 = vpop.eup %1755 }
 0xc0a   :  { %v679_v50 = vadd.f32 1.0, %v1756_v49 }
 0xc0c   :  { %1757 = vrcp.f32 %v679_v50 }
 0xc19   :  { %v1758_v51 = vpop.eup %1757 }
 0xc1a   :  { %v682_v52 = vmul.f32 2.0, %v1758_v51  ;;  %v684_v56 = vmul.f32 %v1758_v51, %v591_v39 }
 0xc1c   :  { %v1448_v53 = vadd.f32 -1.0, %v682_v52 }
 0xc1e   :  { %686 = vrot.lane.b32.xlu0 %v1448_v53, %s1844_s1 }
 0xc90   :  { %v687_v54 = vpop.permute.xlu0 %686 }
 0xc91   :  { %v689_v55 = vmul.f32 %v1758_v51, %v687_v54 }
 0xc93   :  { %691 = vrot.lane.b32.xlu1 %v689_v55, %s1845_s2 }
 0xd05   :  { %v692_v57 = vpop.permute.xlu1 %691 }
 0xd06   :  { %v694_v58 = vadd.f32 %v692_v57, %v684_v56 }
 0xd08   :  { %1759 = vtanh.f32 %v694_v58 }
 0xd15   :  { %v1760_v59 = vpop.eup %1759 }
 0xd16   :  { %697 = vrot.lane.b32.xlu0 %v1760_v59, %s1844_s1 }
 0xd88   :  { %v698_v61 = vpop.permute.xlu0 %697 }
 0xd89   :  { %v700_v1 = vmul.f32 %v1758_v51, %v698_v61  ;;  %v183_v51 = vadd.f32 %v2017_v62, %v1951_v13 }
 0xd8b   :  { %702 = vrot.lane.b32.xlu1 %v700_v1, %s1845_s2 }
 0xdfd   :  { %v703_v2 = vpop.permute.xlu1 %702 }
 0xdfe   :  { %705 = vst.msk [vmem:[#allocation2 + $0x20] sm:$0xff] %vm56_vm1, %v703_v2  ;;  %1639 = vmatmul.mubr.msk.f32.vlgmr.msra.gmra.mxu1 %vm56_vm1, %v703_v2 }
 0xdff   :  { %1653 = vmatpush3.msra.mxu1 %v1892_v3  ;;  %1660 = vmatprep.mubr.msk.f32.mxu1 %vm1843_vm0, %v1842_v0  ;;  %v173_v3 = vadd.f32 %v2013_v60, %v1951_v13 }
 0xe00   :  { %1654 = vmatprep.subr.mxu1 %v1842_v0 }
 0xe01   :  { %1655 = vmatpush3.msra.mxu1 %v1898_v4 }
 0xe02   :  { %1656 = vmatprep.subr.mxu1 %v1842_v0 }
 0xe03   :  { %1657 = vmatpush3.msra.mxu1 %v1911_v7 }
 0xe04   :  { %1658 = vmatprep.subr.mxu1 %v1842_v0 }
 0xe05   :  { %1659 = vmatpush3.msra.mxu1 %v1921_v9  ;;  %v2109_v30 = vld [vmem:[#allocation2 + $0x20] sm:$0xff] }
 0xe06   :  { %1683 = vmatprep.subr.mxu1 %v1842_v0 }
 0xebe   :  { %v774_v5 = vpop.f32.mrf.mxu1 }
 0xebf   :  { %v778_v6 = vadd.f32 %v774_v5, %v173_v3 }
 0xec0   :  { %v1640_v8 = vpop.f32.mrf.mxu1 }
 0xec1   :  { %v1450_v10 = vmul.f32 -1.442695, %v778_v6 }
 0xec3   :  { %1761 = vpow2.f32 %v1450_v10 }
 0xed0   :  { %v1762_v11 = vpop.eup %1761 }
 0xed1   :  { %v782_v4 = vadd.f32 1.0, %v1762_v11  ;;  %v1458_v11 = vld [vmem:[#allocation3 + $0x1] ss:$0 sm:$0xff] }
 0xed3   :  { %1763 = vrcp.f32 %v782_v4 }
 0xee0   :  { %v1764_v12 = vpop.eup %1763 }
 0xee1   :  { %v785_v14 = vmul.f32 2.0, %v1764_v12  ;;  %v787_v16 = vmul.f32 %v1764_v12, %v694_v58 }
 0xee3   :  { %v1451_v7 = vadd.f32 -1.0, %v785_v14 }
 0xee5   :  { %789 = vrot.lane.b32.xlu0 %v1451_v7, %s1844_s1 }
 0xf57   :  { %v790_v15 = vpop.permute.xlu0 %789 }
 0xf58   :  { %v792_v9 = vmul.f32 %v1764_v12, %v790_v15 }
 0xf5a   :  { %794 = vrot.lane.b32.xlu1 %v792_v9, %s1845_s2 }
 0xfcc   :  { %v795_v17 = vpop.permute.xlu1 %794 }
 0xfcd   :  { %v797_v60 = vadd.f32 %v795_v17, %v787_v16  ;;  %v1467_v17 = vld [vmem:[#allocation3 + $0x2] ss:$0 sm:$0xff] }
 0xfcf   :  { %1765 = vtanh.f32 %v797_v60 }
 0xfdc   :  { %v1766_v19 = vpop.eup %1765 }
 0xfdd   :  { %800 = vrot.lane.b32.xlu0 %v1766_v19, %s1844_s1 }
0x104f   :  { %v801_v20 = vpop.permute.xlu0 %800 }
0x1050   :  { %v803_v21 = vmul.f32 %v1764_v12, %v801_v20 }
0x1052   :  { %805 = vrot.lane.b32.xlu1 %v803_v21, %s1845_s2 }
0x10c4   :  { %v806_v22 = vpop.permute.xlu1 %805 }
0x10c5   :  { %808 = vst.msk [vmem:[#allocation2 + $0x28] sm:$0xff] %vm56_vm1, %v806_v22  ;;  %1650 = vmatmul.mubr.msk.f32.vlgmr.msra.gmra.mxu0 %vm56_vm1, %v806_v22 }
0x10c6   :  { %1664 = vmatpush3.msra.mxu0 %v1026_v18  ;;  %1671 = vmatprep.mubr.msk.f32.mxu0 %vm56_vm1, %v2086_v24 }
0x10c7   :  { %1665 = vmatprep.subr.mxu0 %v1025_v23 }
0x10c8   :  { %1666 = vmatpush3.msra.mxu0 %v1025_v23 }
0x10c9   :  { %1667 = vmatprep.subr.mxu0 %v1024_v25 }
0x10ca   :  { %1668 = vmatpush3.msra.mxu0 %v1024_v25 }
0x10cb   :  { %1669 = vmatprep.subr.mxu0 %v1023_v26 }
0x10cc   :  { %1670 = vmatpush3.msra.mxu0 %v1023_v26  ;;  %v2113_v31 = vld [vmem:[#allocation2 + $0x28] sm:$0xff] }
0x10cd   :  { %1672 = vmatmul.mubr.msk.f32.vlgmr.msra.gmra.mxu0 %vm56_vm1, %v2096_v27  ;;  %1702 = vmatprep.subr.mxu0 %v1842_v0 }
0x10ce   :  { %1674 = vmatprep.mubr.msk.f32.mxu0 %vm56_vm1, %v2100_v28 }
0x10d1   :  { %1675 = vmatmul.mubr.msk.f32.gmra.mxu0 %vm56_vm1, %v2105_v29 }
0x10d2   :  { %1677 = vmatprep.mubr.msk.f32.mxu0 %vm56_vm1, %v2109_v30 }
0x10d5   :  { %1678 = vmatmul.mubr.msk.f32.gmra.mxu0 %vm56_vm1, %v2113_v31 }
0x1185   :  { %v877_v33 = vpop.f32.mrf.mxu0 }
0x1186   :  { %v881_v34 = vadd.f32 %v877_v33, %v178_v32 }
0x1187   :  { %v1651_v35 = vpop.f32.mrf.mxu0 }
0x1188   :  { %v1453_v36 = vmul.f32 -1.442695, %v881_v34 }
0x118a   :  { %1767 = vpow2.f32 %v1453_v36 }
0x118d   :  { %v1673_v62 = vpop.f32.mrf.mxu0 }
0x118e   :  { %v1127_v36 = vadd.f32 %v1673_v62, %v1458_v11 }
0x118f   :  { %v1121_v8 = vpop.f32.mrf.mxu0 }
0x1190   :  { %v1122_v4 = vadd.f32 %v1458_v11, %v1121_v8 }
0x1191   :  { %v1676_v10 = vpop.f32.mrf.mxu0 }
0x1192   :  { %v1137_v7 = vadd.f32 %v1676_v10, %v1458_v11 }
0x1193   :  { %v1131_v12 = vpop.f32.mrf.mxu0 }
0x1194   :  { %v1132_v14 = vadd.f32 %v1458_v11, %v1131_v12 }
0x1195   :  { %v1679_v15 = vpop.f32.mrf.mxu0 }
0x1196   :  { %v1147_v9 = vadd.f32 %v1679_v15, %v1458_v11 }
0x1197   :  { %v1768_v37 = vpop.eup %1767 }
0x1198   :  { %v885_v38 = vadd.f32 1.0, %v1768_v37  ;;  %v1141_v37 = vpop.f32.mrf.mxu0 }
0x119a   :  { %1769 = vrcp.f32 %v885_v38  ;;  %v1142_v38 = vadd.f32 %v1458_v11, %v1141_v37 }
0x11a7   :  { %v1770_v39 = vpop.eup %1769 }
0x11a8   :  { %v888_v40 = vmul.f32 2.0, %v1770_v39  ;;  %v890_v44 = vmul.f32 %v1770_v39, %v797_v60 }
0x11aa   :  { %v1454_v41 = vadd.f32 -1.0, %v888_v40 }
0x11ac   :  { %892 = vrot.lane.b32.xlu0 %v1454_v41, %s1844_s1 }
0x121e   :  { %v893_v42 = vpop.permute.xlu0 %892 }
0x121f   :  { %v895_v43 = vmul.f32 %v1770_v39, %v893_v42 }
0x1221   :  { %897 = vrot.lane.b32.xlu1 %v895_v43, %s1845_s2 }
0x1293   :  { %v898_v45 = vpop.permute.xlu1 %897 }
0x1294   :  { %v900_v63 = vadd.f32 %v898_v45, %v890_v44 }
0x1296   :  { %1771 = vtanh.f32 %v900_v63 }
0x12a3   :  { %v1772_v46 = vpop.eup %1771 }
0x12a4   :  { %903 = vrot.lane.b32.xlu0 %v1772_v46, %s1844_s1 }
0x1316   :  { %v904_v47 = vpop.permute.xlu0 %903 }
0x1317   :  { %v906_v48 = vmul.f32 %v1770_v39, %v904_v47 }
0x1319   :  { %908 = vrot.lane.b32.xlu1 %v906_v48, %s1845_s2 }
0x138b   :  { %v909_v49 = vpop.permute.xlu1 %908 }
0x138c   :  { %911 = vst.msk [vmem:[#allocation2 + $0x30] sm:$0xff] %vm56_vm1, %v909_v49  ;;  %1661 = vmatmul.mubr.msk.f32.vlgmr.msra.gmra.mxu1 %vm56_vm1, %v909_v49 }
0x138d   :  { %1699 = vmatprep.mubr.msk.f32.mxu1 %vm1843_vm0, %v1842_v0 }
0x1393   :  { %v2127_v50 = vld [vmem:[#allocation2 + $0x30] sm:$0xff] }
0x1394   :  { %1680 = vmatprep.mubr.msk.f32.mxu0 %vm56_vm1, %v2127_v50 }
0x144c   :  { %v980_v52 = vpop.f32.mrf.mxu1 }
0x144d   :  { %v984_v53 = vadd.f32 %v980_v52, %v183_v51 }
0x144e   :  { %v1662_v54 = vpop.f32.mrf.mxu1 }
0x144f   :  { %v1456_v55 = vmul.f32 -1.442695, %v984_v53 }
0x1451   :  { %1773 = vpow2.f32 %v1456_v55 }
0x145e   :  { %v1774_v56 = vpop.eup %1773 }
0x145f   :  { %v988_v57 = vadd.f32 1.0, %v1774_v56 }
0x1461   :  { %1775 = vrcp.f32 %v988_v57 }
0x146e   :  { %v1776_v58 = vpop.eup %1775 }
0x146f   :  { %v991_v59 = vmul.f32 2.0, %v1776_v58  ;;  %v993_v3 = vmul.f32 %v1776_v58, %v900_v63 }
0x1471   :  { %v1457_v61 = vadd.f32 -1.0, %v991_v59 }
0x1473   :  { %995 = vrot.lane.b32.xlu0 %v1457_v61, %s1844_s1 }
0x14e5   :  { %v996_v1 = vpop.permute.xlu0 %995 }
0x14e6   :  { %v998_v2 = vmul.f32 %v1776_v58, %v996_v1 }
0x14e8   :  { %1000 = vrot.lane.b32.xlu1 %v998_v2, %s1845_s2 }
0x155a   :  { %v1001_v5 = vpop.permute.xlu1 %1000 }
0x155b   :  { %v1003_v13 = vadd.f32 %v1001_v5, %v993_v3 }
0x155d   :  { %1777 = vtanh.f32 %v1003_v13 }
0x155e   :  { %1779 = vtanh.f32 %v1122_v4 }
0x155f   :  { %1781 = vtanh.f32 %v1132_v14 }
0x1560   :  { %1783 = vtanh.f32 %v1137_v7 }
0x1561   :  { %1785 = vtanh.f32 %v1147_v9 }
0x1562   :  { %1787 = vtanh.f32 %v1127_v36 }
0x1563   :  { %1789 = vtanh.f32 %v1142_v38 }
0x156a   :  { %v1778_v6 = vpop.eup %1777 }
0x156b   :  { %1006 = vrot.lane.b32.xlu0 %v1778_v6, %s1844_s1  ;;  %v1780_v16 = vpop.eup %1779 }
0x156c   :  { %v1172_v60 = vmul.f32 %v1780_v16, %v1467_v17  ;;  %v1782_v18 = vpop.eup %1781 }
0x156d   :  { %v1174_v20 = vmul.f32 %v1782_v18, %v1467_v17  ;;  %v1784_v21 = vpop.eup %1783 }
0x156e   :  { %v1180_v19 = vsel %vm56_vm1, %v1172_v60, 0.0  ;;  %v1175_v23 = vmul.f32 %v1784_v21, %v1467_v17  ;;  %v1786_v25 = vpop.eup %1785 }
0x156f   :  { %v1186_v22 = vsel %vm56_vm1, %v1174_v20, 0.0  ;;  %v1177_v32 = vmul.f32 %v1786_v25, %v1467_v17  ;;  %v1788_v39 = vpop.eup %1787 }
0x1570   :  { %v1189_v26 = vsel %vm56_vm1, %v1175_v23, 0.0  ;;  %v1173_v40 = vmul.f32 %v1788_v39, %v1467_v17  ;;  %v1790_v41 = vpop.eup %1789 }
0x1571   :  { %v1195_v33 = vsel %vm56_vm1, %v1177_v32, 0.0  ;;  %v1176_v43 = vmul.f32 %v1790_v41, %v1467_v17 }
0x1572   :  { %v1183_v42 = vsel %vm56_vm1, %v1173_v40, 0.0 }
0x1573   :  { %v1192_v44 = vsel %vm56_vm1, %v1176_v43, 0.0 }
0x158a   :  { %1181 = vadd.xlane.f32.xlu0 %v1180_v19 }
0x158e   :  { %1187 = vadd.xlane.f32.xlu0 %v1186_v22 }
0x1592   :  { %1190 = vadd.xlane.f32.xlu0 %v1189_v26 }
0x1596   :  { %1196 = vadd.xlane.f32.xlu0 %v1195_v33 }
0x15dd   :  { %v1007_v34 = vpop.permute.xlu0 %1006 }
0x15de   :  { %v1009_v35 = vmul.f32 %v1776_v58, %v1007_v34 }
0x15e0   :  { %1011 = vrot.lane.b32.xlu1 %v1009_v35, %s1845_s2 }
0x1604   :  { %1184 = vadd.xlane.f32.xlu1 %v1183_v42 }
0x1608   :  { %1193 = vadd.xlane.f32.xlu1 %v1192_v44 }
0x1613   :  { %v1182_v57 = vpop.xlane.xlu0 %1181 }
0x1617   :  { %v1188_v58 = vpop.xlane.xlu0 %1187 }
0x161b   :  { %v1191_v59 = vpop.xlane.xlu0 %1190 }
0x161f   :  { %v1197_v1 = vpop.xlane.xlu0 %1196 }
0x1652   :  { %v1012_v45 = vpop.permute.xlu1 %1011 }
0x1653   :  { %1014 = vst.msk [vmem:[#allocation2 + $0x38] sm:$0xff] %vm56_vm1, %v1012_v45 }
0x165a   :  { %v2144_v63 = vld [vmem:[#allocation2 + $0x38] sm:$0xff] }
0x165b   :  { %1681 = vmatmul.mubr.msk.f32.gmra.mxu0 %vm56_vm1, %v2144_v63 }
0x165c   :  { %1718 = vmatprep.mubr.msk.f32.mxu0 %vm1843_vm0, %v1842_v0 }
0x168d   :  { %v1185_v61 = vpop.xlane.xlu1 %1184 }
0x168e   :  { %v1205_v62 = vmax.f32 %v1185_v61, %v1197_v1 }
0x1691   :  { %v1194_v2 = vpop.xlane.xlu1 %1193 }
0x1692   :  { %v1204_v5 = vmax.f32 %v1182_v57, %v1194_v2 }
0x1694   :  { %v1208_v10 = vmax.f32 %v1204_v5, %v1205_v62 }
0x171b   :  { %v1682_v46 = vpop.f32.mrf.mxu0 }
0x171c   :  { %v1157_v47 = vadd.f32 %v1682_v46, %v1458_v11 }
0x171d   :  { %v1151_v48 = vpop.f32.mrf.mxu0 }
0x171e   :  { %1791 = vtanh.f32 %v1157_v47  ;;  %v1152_v49 = vadd.f32 %v1458_v11, %v1151_v48 }
0x1720   :  { %1793 = vtanh.f32 %v1152_v49  ;;  %v39_v49 = vld [vmem:[#allocation3 + $0x8] sm:$0xff] }
0x172b   :  { %v1792_v51 = vpop.eup %1791 }
0x172c   :  { %v1179_v52 = vmul.f32 %v1792_v51, %v1467_v17 }
0x172d   :  { %v1794_v53 = vpop.eup %1793 }
0x172e   :  { %v1201_v54 = vsel %vm56_vm1, %v1179_v52, 0.0  ;;  %v1178_v55 = vmul.f32 %v1794_v53, %v1467_v17 }
0x172f   :  { %1202 = vadd.xlane.f32.xlu0 %v1201_v54 }
0x1730   :  { %v1198_v56 = vsel %vm56_vm1, %v1178_v55, 0.0 }
0x1731   :  { %1199 = vadd.xlane.f32.xlu1 %v1198_v56  ;;  %v1470_v56 = vld [vmem:[#allocation3 + $0x3] ss:$0 sm:$0xff] }
0x17b8   :  { %v1203_v3 = vpop.xlane.xlu0 %1202 }
0x17b9   :  { %v1207_v6 = vmax.f32 %v1191_v59, %v1203_v3 }
0x17ba   :  { %v1200_v13 = vpop.xlane.xlu1 %1199 }
0x17bb   :  { %v1206_v8 = vmax.f32 %v1188_v58, %v1200_v13 }
0x17bd   :  { %v1209_v11 = vmax.f32 %v1206_v8, %v1207_v6 }
0x17bf   :  { %v1210_v4 = vmax.f32 %v1208_v10, %v1209_v11 }
0x17c1   :  { %v1211_v12 = vrot.slane %v1210_v4, 4 }
0x17c3   :  { %v1212_v14 = vmax.f32 %v1210_v4, %v1211_v12 }
0x17c5   :  { %v1213_v7 = vrot.slane %v1212_v14, 2 }
0x17c7   :  { %v1214_v15 = vmax.f32 %v1212_v14, %v1213_v7 }
0x17c9   :  { %v1215_v9 = vrot.slane %v1214_v15, 1 }
0x17cb   :  { %v1216_v16 = vmax.f32 %v1214_v15, %v1215_v9 }
0x17cd   :  { %v1223_v17 = vsub.f32 %v1200_v13, %v1216_v16  ;;  %v1224_v60 = vsub.f32 %v1203_v3, %v1216_v16  ;;  %v1222_v18 = vsub.f32 %v1197_v1, %v1216_v16  ;;  %v1221_v20 = vsub.f32 %v1194_v2, %v1216_v16 }
0x17ce   :  { %v1220_v22 = vsub.f32 %v1191_v59, %v1216_v16  ;;  %v1219_v25 = vsub.f32 %v1188_v58, %v1216_v16  ;;  %v1218_v32 = vsub.f32 %v1185_v61, %v1216_v16  ;;  %v1217_v34 = vsub.f32 %v1182_v57, %v1216_v16 }
0x17cf   :  { %v1237_v19 = vmul.f32 1.442695, %v1223_v17  ;;  %v1239_v21 = vmul.f32 1.442695, %v1224_v60  ;;  %v1235_v23 = vmul.f32 1.442695, %v1222_v18 }
0x17d0   :  { %v1233_v26 = vmul.f32 1.442695, %v1221_v20  ;;  %v1231_v33 = vmul.f32 1.442695, %v1220_v22  ;;  %v1229_v35 = vmul.f32 1.442695, %v1219_v25 }
0x17d1   :  { %1795 = vpow2.f32 %v1237_v19  ;;  %v1227_v36 = vmul.f32 1.442695, %v1218_v32  ;;  %v1225_v37 = vmul.f32 1.442695, %v1217_v34 }
0x17d2   :  { %1797 = vpow2.f32 %v1239_v21 }
0x17d3   :  { %1799 = vpow2.f32 %v1235_v23 }
0x17d4   :  { %1801 = vpow2.f32 %v1233_v26 }
0x17d5   :  { %1803 = vpow2.f32 %v1231_v33 }
0x17d6   :  { %1805 = vpow2.f32 %v1229_v35 }
0x17d7   :  { %1807 = vpow2.f32 %v1227_v36 }
0x17d8   :  { %1809 = vpow2.f32 %v1225_v37 }
0x17de   :  { %v1796_v38 = vpop.eup %1795 }
0x17df   :  { %v1798_v39 = vpop.eup %1797  ;;  %v1247_v42 = vmul.f32 %v1796_v38, %v2127_v50 }
0x17e0   :  { %1703 = vmatpush3.msra.mxu0 %v1798_v39  ;;  %v1248_v40 = vmul.f32 %v1798_v39, %v2144_v63  ;;  %v1800_v41 = vpop.eup %1799 }
0x17e1   :  { %1704 = vmatprep.subr.mxu0 %v1842_v0  ;;  %v1802_v43 = vpop.eup %1801  ;;  %v1246_v44 = vmul.f32 %v1800_v41, %v2113_v31 }
0x17e2   :  { %1684 = vmatpush3.msra.mxu1 %v1248_v40  ;;  %1705 = vmatpush3.msra.mxu0 %v1796_v38  ;;  %v1804_v45 = vpop.eup %1803  ;;  %v1245_v63 = vmul.f32 %v1802_v43, %v2109_v30 }
0x17e3   :  { %1685 = vmatprep.subr.mxu1 %v1842_v0  ;;  %1706 = vmatprep.subr.mxu0 %v1842_v0  ;;  %v1806_v46 = vpop.eup %1805  ;;  %v1244_v50 = vmul.f32 %v1804_v45, %v2105_v29 }
0x17e4   :  { %1686 = vmatpush3.msra.mxu1 %v1247_v42  ;;  %1707 = vmatpush3.msra.mxu0 %v1800_v41  ;;  %v1808_v47 = vpop.eup %1807  ;;  %v1243_v31 = vmul.f32 %v1806_v46, %v2100_v28  ;;  %v1846_v28 = vmov 0  }
0x17e5   :  { %1687 = vmatprep.subr.mxu1 %v1842_v0  ;;  %1708 = vmatprep.subr.mxu0 %v1842_v0  ;;  %v1810_v48 = vpop.eup %1809  ;;  %v1242_v30 = vmul.f32 %v1808_v47, %v2096_v27 }
0x17e6   :  { %1688 = vmatpush3.msra.mxu1 %v1246_v44  ;;  %1709 = vmatpush3.msra.mxu0 %v1802_v43  ;;  %v1241_v29 = vmul.f32 %v1810_v48, %v2086_v24 }
0x17e7   :  { %1689 = vmatprep.subr.mxu1 %v1842_v0  ;;  %1710 = vmatprep.subr.mxu0 %v1842_v0 }
0x17e8   :  { %1690 = vmatpush3.msra.mxu1 %v1245_v63  ;;  %1711 = vmatpush3.msra.mxu0 %v1804_v45 }
0x17e9   :  { %1691 = vmatprep.subr.mxu1 %v1842_v0  ;;  %1712 = vmatprep.subr.mxu0 %v1842_v0 }
0x17ea   :  { %1692 = vmatpush3.msra.mxu1 %v1244_v50  ;;  %1713 = vmatpush3.msra.mxu0 %v1806_v46 }
0x17eb   :  { %1693 = vmatprep.subr.mxu1 %v1842_v0  ;;  %1714 = vmatprep.subr.mxu0 %v1842_v0 }
0x17ec   :  { %1694 = vmatpush3.msra.mxu1 %v1243_v31  ;;  %1715 = vmatpush3.msra.mxu0 %v1808_v47 }
0x17ed   :  { %1695 = vmatprep.subr.mxu1 %v1842_v0  ;;  %1716 = vmatprep.subr.mxu0 %v1842_v0 }
0x17ee   :  { %1696 = vmatpush3.msra.mxu1 %v1242_v30  ;;  %1717 = vmatpush3.msra.mxu0 %v1810_v48 }
0x17ef   :  { %1697 = vmatprep.subr.mxu1 %v1842_v0  ;;  %1719 = vmatmul.mubr.msk.f32.vlgmr.msra.gmra.mxu0 %vm1249_vm2, %v39_v49  ;;  %v1471_v0 = vld [vmem:[#allocation3 + $0x4] ss:$0 sm:$0xff] }
0x17f0   :  { %1698 = vmatpush3.msra.mxu1 %v1241_v29  ;;  %1729 = vset.pattern.permute.xlu1 %v1846_v28 }
0x17f1   :  { %1700 = vmatmul.mubr.msk.f32.vlgmr.msra.gmra.mxu1 %vm1249_vm2, %v39_v49  ;;  %1730 = vset.pattern.permute.xlu0 %v1846_v28 }
0x18af   :  { %v1389_v51 = vpop.f32.mrf.mxu0 }
0x18b0   :  { %1811 = vrcp.f32 %v1389_v51 }
0x18b1   :  { %v1720_v27 = vpop.f32.mrf.mxu0  ;;  %v1319_v52 = vpop.f32.mrf.mxu1 }
0x18b3   :  { %v1701_v53 = vpop.f32.mrf.mxu1 }
0x18bd   :  { %v1812_v54 = vpop.eup %1811 }
0x18be   :  { %1396 = vperm.xlu1 %1729, %v1812_v54  }
0x1939   :  { %v1397_v55 = vpop.permute.xlu1 %1396 }
0x193a   :  { %v1399_v57 = vmul.f32 %v1397_v55, %v1319_v52 }
0x193c   :  { %v1404_v58 = vmul.f32 %v1470_v56, %v1399_v57 }
0x193e   :  { %v1405_v24 = vsel %vm56_vm1, %v1404_v58, 0.0 }
0x193f   :  { %1406 = vadd.xlane.f32.xlu0 %v1405_v24 }
0x19c8   :  { %v1407_v59 = vpop.xlane.xlu0 %1406 }
0x19c9   :  { %v1412_v61 = vadd.f32 %v1471_v0, %v1407_v59 }
0x19cb   :  { %v1472_v1 = vmul.f32 -1.442695, %v1412_v61 }
0x19cd   :  { %1813 = vpow2.f32 %v1472_v1 }
0x19da   :  { %v1814_v2 = vpop.eup %1813 }
0x19db   :  { %v1416_v3 = vadd.f32 1.0, %v1814_v2 }
0x19dd   :  { %1815 = vrcp.f32 %v1416_v3 }
0x19ea   :  { %v1816_v5 = vpop.eup %1815 }
0x19eb   :  { %1420 = vst.msk [vmem:[%s2183_s5] sm:$0xff] %vm1419_vm3, %v1816_v5 }
0x19ec   :  { %1425 = vsyncpa [#allocation4], 1 }

</bundles_post_ra>
